<compile_context>
chip_gen: v5e
topology: v5e:2x2
jax: 0.10.0
libtpu: 0.0.40
codegen_flags: <defaults>
</compile_context>

<pallas_src>
import math

import jax
import jax.numpy as jnp
from jax import lax
from jax.experimental import pallas as pl
from jax.experimental.pallas import tpu as pltpu


def _classifier_kernel(x_ref, w_ref, b_ref, o_ref):
    # GELU (tanh approximation) in f32 — rides in VPU/EUP slots (HBM-bound kernel).
    x = x_ref[...].astype(jnp.float32)
    c = math.sqrt(2.0 / math.pi)
    g = 0.5 * x * (1.0 + jnp.tanh(c * (x + 0.044715 * x * x * x)))
    # Feed the MXU in the input dtype (bf16 path on v6e/v7x when inputs are bf16);
    # accumulate in f32.
    g = g.astype(x_ref.dtype)
    out = lax.dot_general(
        g, w_ref[...],
        dimension_numbers=(((1,), (1,)), ((), ())),   # contract over H; w is [Npad, H]
        preferred_element_type=jnp.float32)
    out = out + b_ref[...].astype(jnp.float32)        # single broadcast add, [1, Npad]
    o_ref[...] = out.astype(o_ref.dtype)


def classifier_base_forward(inp, weight, bias, *, tm=512):
    """inp: [..., H]; weight: [N, H] (PyTorch nn.Linear layout); bias: [N]."""
    orig_shape = inp.shape
    H = orig_shape[-1]
    N = weight.shape[0]

    x2d = inp.reshape(-1, H)
    M = x2d.shape[0]

    # --- lane-dense output: pad num_labels up to a multiple of 128 ------------
    n_pad = max(128, pl.cdiv(N, 128) * 128)
    w_p = jnp.pad(weight, ((0, n_pad - N), (0, 0)))          # [Npad, H]
    b_p = jnp.pad(bias, (0, n_pad - N)).reshape(1, n_pad)    # [1, Npad]

    # --- tile the token axis; pad M up to a multiple of the tile --------------
    m_aligned = pl.cdiv(M, 8) * 8            # sublane-aligned lower bound
    tile_m = min(tm, m_aligned)              # tm ~512 amortizes per-step overhead
    m_pad = pl.cdiv(M, tile_m) * tile_m
    x_p = jnp.pad(x2d, ((0, m_pad - M), (0, 0)))

    grid = (m_pad // tile_m,)

    out = pl.pallas_call(
        _classifier_kernel,
        out_shape=jax.ShapeDtypeStruct((m_pad, n_pad), inp.dtype),
        grid_spec=pltpu.PrefetchScalarGridSpec(
            num_scalar_prefetch=0,
            grid=grid,
            in_specs=[
                pl.BlockSpec((tile_m, H), lambda i: (i, 0)),   # activation tiles
                pl.BlockSpec((n_pad, H), lambda i: (0, 0)),    # weight resident
                pl.BlockSpec((1, n_pad), lambda i: (0, 0)),    # bias resident
            ],
            out_specs=pl.BlockSpec((tile_m, n_pad), lambda i: (i, 0)),
        ),
        compiler_params=pltpu.CompilerParams(
            dimension_semantics=("parallel",),       # shard row tiles across TCs (v7x)
            vmem_limit_bytes=48 << 20,               # headroom under v7x's 64 MiB VMEM
        ),
    )(x_p, w_p, b_p)

    out = out[:M, :N]
    return out.reshape(orig_shape[:-1] + (N,))


def _reference(inp, weight, bias):
    c = math.sqrt(2.0 / math.pi)
    x = inp.astype(jnp.float32)
    g = 0.5 * x * (1.0 + jnp.tanh(c * (x + 0.044715 * x ** 3)))
    return g @ weight.T.astype(jnp.float32) + bias.astype(jnp.float32)


if __name__ == "__main__":
    key = jax.random.PRNGKey(0)
    k_x, k_w, k_b = jax.random.split(key, 3)

    batch, seq, hidden, num_labels = 2, 8, 32, 4

    # Deterministic synthetic parameters (nn.Linear-style init scale).
    inp = jax.random.normal(k_x, (batch, seq, hidden), dtype=jnp.float32)
    bound = 1.0 / math.sqrt(hidden)
    weight = jax.random.uniform(k_w, (num_labels, hidden), dtype=jnp.float32,
                                minval=-bound, maxval=bound)
    bias = jax.random.uniform(k_b, (num_labels,), dtype=jnp.float32,
                              minval=-bound, maxval=bound)

    out = classifier_base_forward(inp, weight, bias)
    out = jax.block_until_ready(out)

    ref = _reference(inp, weight, bias)
    assert out.shape == (batch, seq, num_labels), out.shape
    assert jnp.allclose(out, ref, atol=1e-5, rtol=1e-5), \
        float(jnp.max(jnp.abs(out - ref)))

    print("KERNEL_OK")
</pallas_src>

<mosaic_0001>
module attributes {stable_mosaic.version = 11 : i64} {
  func.func @_classifier_kernel(%arg0: i32, %arg1: memref<16x32xf32, #tpu.memory_space<vmem>>, %arg2: memref<128x32xf32, #tpu.memory_space<vmem>>, %arg3: memref<1x128xf32, #tpu.memory_space<vmem>>, %arg4: memref<16x128xf32, #tpu.memory_space<vmem>>) attributes {dimension_semantics = [#tpu.dimension_semantics<parallel>], iteration_bounds = array<i64: 1>, scalar_prefetch = 0 : i64, scratch_operands = 0 : i64, tpu.core_type = #tpu.core_type<tc>, window_params = [{transform_indices = @transform_0, window_bounds = array<i64: 16, 32>}, {pipeline_mode = #tpu.pipeline_mode<synchronous>, transform_indices = @transform_1, window_bounds = array<i64: 128, 32>}, {pipeline_mode = #tpu.pipeline_mode<synchronous>, transform_indices = @transform_2, window_bounds = array<i64: 1, 128>}, {transform_indices = @transform_3, window_bounds = array<i64: 16, 128>}]} {
    %c0 = arith.constant 0 : index
    %c0_0 = arith.constant 0 : index
    %0 = vector.load %arg1[%c0, %c0_0] : memref<16x32xf32, #tpu.memory_space<vmem>>, vector<16x32xf32>
    %cst = arith.constant 5.000000e-01 : f32
    %1 = vector.broadcast %cst : f32 to vector<16x32xf32>
    %2 = arith.mulf %1, %0 : vector<16x32xf32>
    %cst_1 = arith.constant 4.471500e-02 : f32
    %3 = vector.broadcast %cst_1 : f32 to vector<16x32xf32>
    %4 = arith.mulf %3, %0 : vector<16x32xf32>
    %5 = arith.mulf %4, %0 : vector<16x32xf32>
    %6 = arith.mulf %5, %0 : vector<16x32xf32>
    %7 = arith.addf %0, %6 : vector<16x32xf32>
    %cst_2 = arith.constant 0.797884583 : f32
    %8 = vector.broadcast %cst_2 : f32 to vector<16x32xf32>
    %9 = arith.mulf %8, %7 : vector<16x32xf32>
    %10 = math.tanh %9 : vector<16x32xf32>
    %cst_3 = arith.constant 1.000000e+00 : f32
    %11 = vector.broadcast %cst_3 : f32 to vector<16x32xf32>
    %12 = arith.addf %11, %10 : vector<16x32xf32>
    %13 = arith.mulf %2, %12 : vector<16x32xf32>
    %c0_4 = arith.constant 0 : index
    %c0_5 = arith.constant 0 : index
    %14 = vector.load %arg2[%c0_4, %c0_5] : memref<128x32xf32, #tpu.memory_space<vmem>>, vector<128x32xf32>
    %cst_6 = arith.constant dense<0.000000e+00> : vector<16x128xf32>
    %15 = tpu.matmul %13, %14, %cst_6 {dimension_numbers = #tpu.dot_dimension_numbers<[1], [1], [0], [0], [0, 0, 1, 0], [], []>} : vector<16x32xf32>, vector<128x32xf32>, vector<16x128xf32> -> vector<16x128xf32>
    %c0_7 = arith.constant 0 : index
    %c0_8 = arith.constant 0 : index
    %16 = vector.load %arg3[%c0_7, %c0_8] : memref<1x128xf32, #tpu.memory_space<vmem>>, vector<1x128xf32>
    %17 = vector.broadcast %16 : vector<1x128xf32> to vector<16x128xf32>
    %18 = arith.addf %15, %17 : vector<16x128xf32>
    %c0_9 = arith.constant 0 : index
    %c0_10 = arith.constant 0 : index
    %19 = vector.load %arg4[%c0_9, %c0_10] : memref<16x128xf32, #tpu.memory_space<vmem>>, vector<16x128xf32>
    tpu.vector_store %arg4[%c0_9, %c0_10], %18 {strides = array<i32>} : memref<16x128xf32, #tpu.memory_space<vmem>>, vector<16x128xf32>,
    return
  }
  func.func @transform_0(%arg0: i32) -> (i32, i32) {
    %c0_i32 = arith.constant 0 : i32
    %c0_i32_0 = arith.constant 0 : i32
    return %arg0, %c0_i32 : i32, i32
  }
  func.func @transform_1(%arg0: i32) -> (i32, i32) {
    %c0_i32 = arith.constant 0 : i32
    %c0_i32_0 = arith.constant 0 : i32
    %c0_i32_1 = arith.constant 0 : i32
    return %c0_i32, %c0_i32_0 : i32, i32
  }
  func.func @transform_2(%arg0: i32) -> (i32, i32) {
    %c0_i32 = arith.constant 0 : i32
    %c0_i32_0 = arith.constant 0 : i32
    %c0_i32_1 = arith.constant 0 : i32
    return %c0_i32, %c0_i32_0 : i32, i32
  }
  func.func @transform_3(%arg0: i32) -> (i32, i32) {
    %c0_i32 = arith.constant 0 : i32
    %c0_i32_0 = arith.constant 0 : i32
    return %arg0, %c0_i32 : i32, i32
  }
}

</mosaic_0001>

<bundles_post_ra>
// kernel: tpu_custom_call.1
= control target key start
LH: loop header
LB: loop body
LE: loop exit
PB: predicated region body
PF: predicated region fallthrough
CT: control target
= control target key end

     0   :  { %vm55_vm0 = vcmask 261120   ;;  %s338_s0 = inlined_call_operand.vmem [shape: f32[16,32], index: 0, kind: input, shape index: {}]   ;;  %s339_s1 = inlined_call_operand.vmem [shape: f32[128,32], index: 1, kind: input, shape index: {}]   ;;  %s340_s2 = inlined_call_operand.vmem [shape: f32[1,128], index: 2, kind: input, shape index: {}]   ;;  %s341_s3 = inlined_call_operand.hbm [shape: f32[16,128], index: 3, kind: output, shape index: {}]  }
   0x1   :  { %v50_v0 = vld [vmem:[%s339_s1 + $0x78] sm:$0xff]  ;;  %v49_v1 = vld [vmem:[%s339_s1 + $0x70] sm:$0xff] }
   0x2   :  { %153 = vmatpush.xpose.msk.msra.mxu0 %vm55_vm0, %v50_v0  ;;  %171 = vmatpush.xpose.msk.msra.mxu1 %vm55_vm0, %v50_v0 }
   0x3   :  { %8 = vsyncpa [#allocation3], 0  ;;  %v48_v2 = vld [vmem:[%s339_s1 + $0x68] sm:$0xff]  ;;  %v47_v3 = vld [vmem:[%s339_s1 + $0x60] sm:$0xff]  ;;  %s221_s22 = smov [#allocation2]   ;;  %s222_s26 = smov 128  }
   0x4   :  { %v46_v4 = vld [vmem:[%s339_s1 + $0x58] sm:$0xff]  ;;  %v45_v5 = vld [vmem:[%s339_s1 + $0x50] sm:$0xff]  ;;  %v44_v6 = vld [vmem:[%s339_s1 + $0x48] sm:$0xff]  ;;  %s139_s23 = sshll.u32 %s221_s22, 4  ;;  %s223_s27 = smov 8   ;;  %s140_s23 = int_to_ptr.vmem [resolvable:$true] %s139_s23 }
   0x5   :  { %v15_v7 = vld [vmem:[%s338_s0] sm:$0xff]  ;;  %v16_v8 = vld [vmem:[%s338_s0 + $0x8] sm:$0xff]  ;;  %v42_v12 = vld [vmem:[%s339_s1 + $0x38] sm:$0xff] }
   0x6   :  { %154 = vmatpush.xpose.msk.msra.mxu0 %vm55_vm0, %v49_v1  ;;  %172 = vmatpush.xpose.msk.msra.mxu1 %vm55_vm0, %v49_v1  ;;  %v43_v9 = vld [vmem:[%s339_s1 + $0x40] sm:$0xff]  ;;  %v19_v10 = vmul.f32 0.044715, %v15_v7  ;;  %v20_v11 = vmul.f32 0.044715, %v16_v8  ;;  %v41_v15 = vld [vmem:[%s339_s1 + $0x30] sm:$0xff] }
   0x7   :  { %v40_v18 = vld [vmem:[%s339_s1 + $0x28] sm:$0xff]  ;;  %v39_v21 = vld [vmem:[%s339_s1 + $0x20] sm:$0xff]  ;;  %v38_v24 = vld [vmem:[%s339_s1 + $0x18] sm:$0xff]  ;;  %v17_v29 = vmul.f32 0.5, %v15_v7  ;;  %v18_v31 = vmul.f32 0.5, %v16_v8 }
   0x8   :  { %v21_v13 = vmul.f32 %v19_v10, %v15_v7  ;;  %v22_v14 = vmul.f32 %v20_v11, %v16_v8  ;;  %v37_v25 = vld [vmem:[%s339_s1 + $0x10] sm:$0xff]  ;;  %v36_v28 = vld [vmem:[%s339_s1 + $0x8] sm:$0xff]  ;;  %v35_v33 = vld [vmem:[%s339_s1] sm:$0xff]  ;;  %s141_s1 = sshll.u32 %s341_s3, 4  ;;  %s142_s1 = int_to_ptr.hbm [resolvable:$true] %s141_s1 }
   0x9   :  { %v190_v36 = vld [vmem:[%s340_s2] ss:$0 sm:$0xff] }
   0xa   :  { %155 = vmatpush.xpose.msk.msra.mxu0 %vm55_vm0, %v48_v2  ;;  %173 = vmatpush.xpose.msk.msra.mxu1 %vm55_vm0, %v48_v2  ;;  %v23_v16 = vmul.f32 %v21_v13, %v15_v7  ;;  %v24_v17 = vmul.f32 %v22_v14, %v16_v8 }
   0xc   :  { %v25_v19 = vadd.f32 %v23_v16, %v15_v7  ;;  %v26_v20 = vadd.f32 %v24_v17, %v16_v8 }
   0xe   :  { %156 = vmatpush.xpose.msk.msra.mxu0 %vm55_vm0, %v47_v3  ;;  %174 = vmatpush.xpose.msk.msra.mxu1 %vm55_vm0, %v47_v3  ;;  %v27_v22 = vmul.f32 0.7978846, %v25_v19  ;;  %v28_v23 = vmul.f32 0.7978846, %v26_v20 }
  0x10   :  { %191 = vtanh.f32 %v27_v22 }
  0x11   :  { %193 = vtanh.f32 %v28_v23 }
  0x12   :  { %157 = vmatpush.xpose.msk.msra.mxu0 %vm55_vm0, %v46_v4  ;;  %175 = vmatpush.xpose.msk.msra.mxu1 %vm55_vm0, %v46_v4 }
  0x16   :  { %158 = vmatpush.xpose.msk.msra.mxu0 %vm55_vm0, %v45_v5  ;;  %176 = vmatpush.xpose.msk.msra.mxu1 %vm55_vm0, %v45_v5  ;;  %v192_v26 = vpop.eup %191 }
  0x17   :  { %v194_v27 = vpop.eup %193  ;;  %v31_v30 = vadd.f32 1.0, %v192_v26 }
  0x18   :  { %v32_v32 = vadd.f32 1.0, %v194_v27 }
  0x19   :  { %v33_v34 = vmul.f32 %v31_v30, %v17_v29 }
  0x1a   :  { %159 = vmatpush.xpose.msk.msra.mxu0 %vm55_vm0, %v44_v6  ;;  %177 = vmatpush.xpose.msk.msra.mxu1 %vm55_vm0, %v44_v6  ;;  %v34_v35 = vmul.f32 %v32_v32, %v18_v31 }
  0x1e   :  { %160 = vmatpush.xpose.msk.msra.mxu0 %vm55_vm0, %v43_v9  ;;  %178 = vmatpush.xpose.msk.msra.mxu1 %vm55_vm0, %v43_v9 }
  0x22   :  { %161 = vmatpush.xpose.msk.msra.mxu0 %vm55_vm0, %v42_v12  ;;  %179 = vmatpush.xpose.msk.msra.mxu1 %vm55_vm0, %v42_v12 }
  0x26   :  { %162 = vmatpush.xpose.msk.msra.mxu0 %vm55_vm0, %v41_v15  ;;  %180 = vmatpush.xpose.msk.msra.mxu1 %vm55_vm0, %v41_v15 }
  0x2a   :  { %163 = vmatpush.xpose.msk.msra.mxu0 %vm55_vm0, %v40_v18  ;;  %181 = vmatpush.xpose.msk.msra.mxu1 %vm55_vm0, %v40_v18 }
  0x2e   :  { %164 = vmatpush.xpose.msk.msra.mxu0 %vm55_vm0, %v39_v21  ;;  %182 = vmatpush.xpose.msk.msra.mxu1 %vm55_vm0, %v39_v21 }
  0x32   :  { %165 = vmatpush.xpose.msk.msra.mxu0 %vm55_vm0, %v38_v24  ;;  %183 = vmatpush.xpose.msk.msra.mxu1 %vm55_vm0, %v38_v24 }
  0x36   :  { %166 = vmatpush.xpose.msk.msra.mxu0 %vm55_vm0, %v37_v25  ;;  %184 = vmatpush.xpose.msk.msra.mxu1 %vm55_vm0, %v37_v25 }
  0x3a   :  { %167 = vmatpush.xpose.msk.msra.mxu0 %vm55_vm0, %v36_v28  ;;  %185 = vmatpush.xpose.msk.msra.mxu1 %vm55_vm0, %v36_v28 }
  0x3e   :  { %168 = vmatpush.xpose.msk.msra.mxu0 %vm55_vm0, %v35_v33  ;;  %186 = vmatpush.xpose.msk.msra.mxu1 %vm55_vm0, %v35_v33 }
  0x41   :  { %169 = vmatmul.msk.f32.vlgmr.msra.gmra.mxu0 %vm55_vm0, %v33_v34  ;;  %170 = vmatmul.msk.f32.vlgmr.msra.gmra.mxu1 %vm55_vm0, %v34_v35 }
  0xbe   :  { %v127_v37 = vpop.f32.mrf.mxu0  ;;  %v130_v38 = vpop.f32.mrf.mxu1 }
  0xbf   :  { %v128_v39 = vadd.f32 %v190_v36, %v127_v37  ;;  %v131_v40 = vadd.f32 %v190_v36, %v130_v38 }
  0xc1   :  { %133 = vst [vmem:[#allocation2] sm:$0xff] %v128_v39 }
  0xc2   :  { %134 = vst [vmem:[#allocation2 + $0x8] sm:$0xff] %v131_v40 }
  0xc3   :  { %147 = dma.vmem_to_hbm [thread:$0]  %s140_s23, 256, %s142_s1, [#allocation3], %s222_s26, %s222_s26, %s223_s27  }
  0xc4   :  { %219 = dma.done.wait [#allocation3], 256  }
  0xc5   :  { %220 = vsyncadd [#allocation3], 4294967040 }
  0xc6   :  { %152 = vsyncpa [#allocation3], 1 }

</bundles_post_ra>
